<compile_context>
chip_gen: v7x
topology: tpu7x:2x2x1
jax: 0.10.0
libtpu: 0.0.40
codegen_flags: <defaults>
</compile_context>

<pallas_src>
import functools

import jax
import jax.numpy as jnp
import numpy as np
from jax.experimental import pallas as pl
from jax.experimental.pallas import tpu as pltpu


def sge_kernel(x_ref, w_ref, b_ref, sel_ref, rep_ref, o_ref, *,
               cg, hw, chunk, n_chunks):
    """One grid step: (n_chunks*chunk) groups laid out as (rows, hw) channel rows."""
    inv_hw = 1.0 / hw
    rows_pc = chunk * cg                          # channel rows per chunk

    # Tiny resident operands (constant index_map -> never re-DMA'd).
    sel = sel_ref[...]                            # (chunk, rows_pc) group-sum one-hot
    rep = rep_ref[...]                            # (rows_pc, chunk) gate replication
    w_blk = w_ref[0]                              # (bgt, 1) f32 per-group weight
    b_blk = b_ref[0]                              # (bgt, 1) f32 per-group bias

    for j in range(n_chunks):
        r0 = j * rows_pc
        if n_chunks == 1:
            xc = x_ref[...]
        else:
            xc = x_ref[pl.ds(r0, rows_pc), :]
        xc = xc.astype(jnp.float32)               # (rows_pc, hw) stats in f32

        # Per-channel spatial mean.  The reduction is over the logical hw lanes
        # (compiler-masked), so no explicit padding / lane mask is needed even
        # when hw % 128 != 0.
        ch_mean = jnp.sum(xc, axis=1, keepdims=True) * inv_hw
        xn = xc * ch_mean

        # Sum over the cg channels of each group via a one-hot matmul on the
        # otherwise-idle MXU (avoids sublane reshapes/relayouts).  chunk <= 64
        # bounds MXU MACs/element well below the HBM roofline on all gens.
        t = jnp.dot(sel, xn, preferred_element_type=jnp.float32,
                    precision=jax.lax.Precision.HIGHEST)          # (chunk, hw)

        # Per-group normalization (unbiased std, eps added to std).
        # NOTE: hw == 1 gives inf/NaN, matching torch's unbiased std.
        t_mean = jnp.sum(t, axis=1, keepdims=True) * inv_hw
        tc = t - t_mean
        var = jnp.sum(tc * tc, axis=1, keepdims=True) * (1.0 / (hw - 1))
        inv_std = 1.0 / (jnp.sqrt(var) + 1e-5)                    # (chunk, 1)

        # Per-group affine folded into the scale; sigmoid evaluated once per
        # group row (cg x less EUP work than per channel row).
        w_c = w_blk[j * chunk:(j + 1) * chunk]                    # (chunk, 1)
        b_c = b_blk[j * chunk:(j + 1) * chunk]
        gate = jax.nn.sigmoid(tc * (inv_std * w_c) + b_c)         # (chunk, hw)

        # Replicate each group's gate onto its cg channel rows (one-hot matmul,
        # no sublane broadcast/relayout) and apply.
        gate_rows = jnp.dot(rep, gate, preferred_element_type=jnp.float32,
                            precision=jax.lax.Precision.HIGHEST)  # (rows_pc, hw)
        res = (xc * gate_rows).astype(o_ref.dtype)
        if n_chunks == 1:
            o_ref[...] = res
        else:
            o_ref[pl.ds(r0, rows_pc), :] = res


def _row_alignment(dtype):
    itemsize = jnp.dtype(dtype).itemsize
    return max(8, 32 // itemsize)                 # 8 for f32, 16 for bf16


def _default_vmem_budget():
    """Generation-aware working-set budget (v7x has only 64 MiB VMEM per TC)."""
    try:
        cap = pltpu.get_tpu_info().vmem_capacity_bytes
    except Exception:  # no TPU info available at trace time -> conservative
        cap = 64 * 1024 * 1024
    return max(8 * 1024 * 1024, min(int(cap * 0.4), 32 * 1024 * 1024))


def _choose_chunk(bgt, cg, row_align, max_groups=64):
    """Groups per in-kernel chunk: bounds one-hot-matmul MACs per element."""
    if bgt <= max_groups:
        return bgt
    cands = [d for d in range(1, bgt + 1)
             if bgt % d == 0 and d <= max_groups and d % 8 == 0
             and (d * cg) % row_align == 0]
    return max(cands) if cands else bgt


def _choose_groups_per_block(bg, cg, hw, io_bytes, row_align, budget,
                             max_chunks=8):
    """How many (b*g) groups each grid step processes (and the chunk size)."""

    def chunk_of(d):
        return _choose_chunk(d, cg, row_align)

    def footprint(d):
        rows_pc = chunk_of(d) * cg
        blocks = 4 * d * cg * hw * io_bytes        # in + out, double-buffered
        temps = 4 * rows_pc * hw * 4               # xc/xn/gate_rows/result (f32)
        aux = 4 * chunk_of(d) * rows_pc * 4        # sel + rep (x2 buffers)
        return blocks + temps + aux

    valid = []
    for d in range(1, bg + 1):
        if bg % d:
            continue
        # x block rows = d*cg must be sublane-aligned unless the block spans
        # the full array; params are always full-dim legal (see wrapper).
        if d != bg and (d * cg) % row_align != 0:
            continue
        if d // chunk_of(d) > max_chunks:          # bound unrolled chunk loop
            continue
        valid.append(d)
    if not valid:
        valid = [bg]

    fitting = [d for d in valid if footprint(d) <= budget]
    if not fitting:
        fitting = [min(valid, key=footprint)]

    # Prefer >= 2 grid steps with an even count (shards cleanly across v7x's
    # two TensorCores), then >= 2 steps, then the largest block.
    for pred in (lambda d: bg // d >= 2 and (bg // d) % 2 == 0,
                 lambda d: bg // d >= 2,
                 lambda d: True):
        sub = [d for d in fitting if pred(d)]
        if sub:
            d = max(sub)
            return d, chunk_of(d), footprint(d)


def sge_forward(x, weight, bias, groups=8, vmem_budget_bytes=None):
    """x: (B, C, H, W); weight/bias: (1, groups, 1, 1). Returns x's shape/dtype."""
    b, c, h, w = x.shape
    assert c % groups == 0
    cg = c // groups
    hw = h * w
    bg = b * groups

    dtype = x.dtype
    io_bytes = jnp.dtype(dtype).itemsize
    row_align = _row_alignment(dtype)
    if vmem_budget_bytes is None:
        vmem_budget_bytes = _default_vmem_budget()

    bgt, chunk, fp = _choose_groups_per_block(bg, cg, hw, io_bytes, row_align,
                                              vmem_budget_bytes)
    rt = bgt * cg                                 # channel rows per grid step
    rows_pc = chunk * cg
    n_chunks = bgt // chunk
    n_steps = bg // bgt

    # x presented as the dense 2-D (B*C, H*W) slab in its original dtype: no
    # extra pad / slice / cast HBM passes (reshape is a layout no-op).
    x2 = x.reshape(b * c, hw)

    # Per-(b*g) params shaped (steps, bgt, 1): the block's trailing dims always
    # equal the full array dims, so any bgt is legal.
    w_bg = jnp.tile(weight.reshape(groups), (b,)).astype(jnp.float32)
    b_bg = jnp.tile(bias.reshape(groups), (b,)).astype(jnp.float32)
    w_bg = w_bg.reshape(n_steps, bgt, 1)
    b_bg = b_bg.reshape(n_steps, bgt, 1)

    # One-hot group-sum / gate-replication operators for one chunk, built once
    # on the host and kept resident in VMEM (constant index_map).
    sel_np = np.kron(np.eye(chunk, dtype=np.float32),
                     np.ones((1, cg), np.float32))                # (chunk, rows_pc)
    sel_const = jnp.asarray(sel_np)
    rep_const = jnp.asarray(sel_np.T)                             # (rows_pc, chunk)

    vmem_limit = int(min(max(int(fp * 1.5) + (2 << 20), 20 << 20), 48 << 20))

    kernel = functools.partial(sge_kernel, cg=cg, hw=hw, chunk=chunk,
                               n_chunks=n_chunks)
    out = pl.pallas_call(
        kernel,
        out_shape=jax.ShapeDtypeStruct((b * c, hw), dtype),
        grid=(n_steps,),
        in_specs=[
            pl.BlockSpec((rt, hw), lambda i: (i, 0)),
            pl.BlockSpec((1, bgt, 1), lambda i: (i, 0, 0)),
            pl.BlockSpec((1, bgt, 1), lambda i: (i, 0, 0)),
            pl.BlockSpec((chunk, rows_pc), lambda i: (0, 0)),
            pl.BlockSpec((rows_pc, chunk), lambda i: (0, 0)),
        ],
        out_specs=pl.BlockSpec((rt, hw), lambda i: (i, 0)),
        compiler_params=pltpu.CompilerParams(
            dimension_semantics=("parallel",),
            vmem_limit_bytes=vmem_limit),
    )(x2, w_bg, b_bg, sel_const, rep_const)

    return out.reshape(b, c, h, w)


def sge_reference(x, weight, bias, groups=8):
    """Pure-JAX reference mirroring the PyTorch forward exactly."""
    b, c, h, w = x.shape
    xg = x.reshape(b * groups, c // groups, h, w)
    pooled = jnp.mean(xg, axis=(2, 3), keepdims=True)
    xn = (xg * pooled).sum(axis=1, keepdims=True)
    t = xn.reshape(b * groups, -1)
    t = t - t.mean(axis=1, keepdims=True)
    std = jnp.std(t, axis=1, keepdims=True, ddof=1) + 1e-5
    t = t / std
    t = t.reshape(b, groups, h, w)
    t = t * weight + bias
    t = t.reshape(b * groups, 1, h, w)
    xg = xg * jax.nn.sigmoid(t)
    return xg.reshape(b, c, h, w)


if __name__ == "__main__":
    groups = 8
    key = jax.random.PRNGKey(0)
    kx, kw, kb = jax.random.split(key, 3)

    configs = [
        # (shape, dtype, random_params)
        ((2, 32, 16, 16), jnp.float32, False),   # init params: gate == 0.5 exactly
        ((2, 32, 16, 16), jnp.float32, True),    # full gate path
        ((2, 32, 7, 7), jnp.float32, True),      # hw=49: non-128 lane tail
        ((2, 32, 16, 16), jnp.bfloat16, True),   # bf16 HBM I/O path
        ((32, 16, 8, 8), jnp.float32, True),     # bg=256: multi-chunk in-kernel loop
    ]
    for idx, (shape, dtype, rand_params) in enumerate(configs):
        x = jax.random.normal(jax.random.fold_in(kx, idx), shape,
                              dtype=jnp.float32).astype(dtype)
        if rand_params:
            weight = 0.5 * jax.random.normal(jax.random.fold_in(kw, idx),
                                             (1, groups, 1, 1), dtype=jnp.float32)
            bias = 0.5 * jax.random.normal(jax.random.fold_in(kb, idx),
                                           (1, groups, 1, 1), dtype=jnp.float32)
        else:
            weight = jnp.zeros((1, groups, 1, 1), dtype=jnp.float32)
            bias = jnp.zeros((1, groups, 1, 1), dtype=jnp.float32)

        out = jax.block_until_ready(sge_forward(x, weight, bias, groups=groups))
        ref = sge_reference(x.astype(jnp.float32), weight, bias, groups=groups)
        out_np = np.asarray(out).astype(np.float32)
        ref_np = np.asarray(ref)
        if dtype == jnp.bfloat16:
            np.testing.assert_allclose(out_np, ref_np, rtol=2e-2, atol=2e-2)
        else:
            np.testing.assert_allclose(out_np, ref_np, rtol=1e-4, atol=2e-5)

    print("KERNEL_OK")
</pallas_src>

<mosaic_0001>
module attributes {stable_mosaic.version = 11 : i64} {
  func.func @sge_kernel(%arg0: i32, %arg1: memref<32x256xf32, #tpu.memory_space<vmem>>, %arg2: memref<1x8x1xf32, #tpu.memory_space<vmem>>, %arg3: memref<1x8x1xf32, #tpu.memory_space<vmem>>, %arg4: memref<8x32xf32, #tpu.memory_space<vmem>>, %arg5: memref<32x8xf32, #tpu.memory_space<vmem>>, %arg6: memref<32x256xf32, #tpu.memory_space<vmem>>) attributes {dimension_semantics = [#tpu.dimension_semantics<parallel>], iteration_bounds = array<i64: 2>, scalar_prefetch = 0 : i64, scratch_operands = 0 : i64, tpu.core_type = #tpu.core_type<tc>, window_params = [{transform_indices = @transform_0, window_bounds = array<i64: 32, 256>}, {transform_indices = @transform_1, window_bounds = array<i64: 1, 8, 1>}, {transform_indices = @transform_2, window_bounds = array<i64: 1, 8, 1>}, {pipeline_mode = #tpu.pipeline_mode<synchronous>, transform_indices = @transform_3, window_bounds = array<i64: 8, 32>}, {pipeline_mode = #tpu.pipeline_mode<synchronous>, transform_indices = @transform_4, window_bounds = array<i64: 32, 8>}, {transform_indices = @transform_5, window_bounds = array<i64: 32, 256>}]} {
    %c0 = arith.constant 0 : index
    %c0_0 = arith.constant 0 : index
    %0 = vector.load %arg4[%c0, %c0_0] : memref<8x32xf32, #tpu.memory_space<vmem>>, vector<8x32xf32>
    %c0_1 = arith.constant 0 : index
    %c0_2 = arith.constant 0 : index
    %1 = vector.load %arg5[%c0_1, %c0_2] : memref<32x8xf32, #tpu.memory_space<vmem>>, vector<32x8xf32>
    %c0_3 = arith.constant 0 : index
    %c0_4 = arith.constant 0 : index
    %c0_5 = arith.constant 0 : index
    %2 = vector.load %arg2[%c0_3, %c0_4, %c0_5] : memref<1x8x1xf32, #tpu.memory_space<vmem>>, vector<1x8x1xf32>
    %3 = vector.shape_cast %2 : vector<1x8x1xf32> to vector<8x1xf32>
    %c0_6 = arith.constant 0 : index
    %c0_7 = arith.constant 0 : index
    %c0_8 = arith.constant 0 : index
    %4 = vector.load %arg3[%c0_6, %c0_7, %c0_8] : memref<1x8x1xf32, #tpu.memory_space<vmem>>, vector<1x8x1xf32>
    %5 = vector.shape_cast %4 : vector<1x8x1xf32> to vector<8x1xf32>
    %c0_9 = arith.constant 0 : index
    %c0_10 = arith.constant 0 : index
    %6 = vector.load %arg1[%c0_9, %c0_10] : memref<32x256xf32, #tpu.memory_space<vmem>>, vector<32x256xf32>
    %cst = arith.constant dense<0.000000e+00> : vector<32xf32>
    %7 = vector.multi_reduction <add>, %6, %cst [1] : vector<32x256xf32> to vector<32xf32>
    %8 = vector.shape_cast %7 : vector<32xf32> to vector<32x1xf32>
    %cst_11 = arith.constant 3.906250e-03 : f32
    %9 = vector.broadcast %cst_11 : f32 to vector<32x1xf32>
    %10 = arith.mulf %8, %9 : vector<32x1xf32>
    %11 = vector.broadcast %10 : vector<32x1xf32> to vector<32x256xf32>
    %12 = arith.mulf %6, %11 : vector<32x256xf32>
    %cst_12 = arith.constant dense<0.000000e+00> : vector<8x256xf32>
    %13 = tpu.matmul %0, %12, %cst_12 {dimension_numbers = #tpu.dot_dimension_numbers<[1], [0], [0], [1], [0, 0, 1, 1], [], []>, precision = #tpu.contract_precision<fp32>} : vector<8x32xf32>, vector<32x256xf32>, vector<8x256xf32> -> vector<8x256xf32>
    %cst_13 = arith.constant dense<0.000000e+00> : vector<8xf32>
    %14 = vector.multi_reduction <add>, %13, %cst_13 [1] : vector<8x256xf32> to vector<8xf32>
    %15 = vector.shape_cast %14 : vector<8xf32> to vector<8x1xf32>
    %cst_14 = arith.constant 3.906250e-03 : f32
    %16 = vector.broadcast %cst_14 : f32 to vector<8x1xf32>
    %17 = arith.mulf %15, %16 : vector<8x1xf32>
    %18 = vector.broadcast %17 : vector<8x1xf32> to vector<8x256xf32>
    %19 = arith.subf %13, %18 : vector<8x256xf32>
    %20 = arith.mulf %19, %19 : vector<8x256xf32>
    %cst_15 = arith.constant dense<0.000000e+00> : vector<8xf32>
    %21 = vector.multi_reduction <add>, %20, %cst_15 [1] : vector<8x256xf32> to vector<8xf32>
    %22 = vector.shape_cast %21 : vector<8xf32> to vector<8x1xf32>
    %cst_16 = arith.constant 0.00392156886 : f32
    %23 = vector.broadcast %cst_16 : f32 to vector<8x1xf32>
    %24 = arith.mulf %22, %23 : vector<8x1xf32>
    %25 = math.sqrt %24 : vector<8x1xf32>
    %cst_17 = arith.constant 9.99999974E-6 : f32
    %26 = vector.broadcast %cst_17 : f32 to vector<8x1xf32>
    %27 = arith.addf %25, %26 : vector<8x1xf32>
    %cst_18 = arith.constant 1.000000e+00 : f32
    %28 = vector.broadcast %cst_18 : f32 to vector<8x1xf32>
    %29 = arith.divf %28, %27 : vector<8x1xf32>
    %30 = arith.mulf %29, %3 : vector<8x1xf32>
    %31 = vector.broadcast %30 : vector<8x1xf32> to vector<8x256xf32>
    %32 = arith.mulf %19, %31 : vector<8x256xf32>
    %33 = vector.broadcast %5 : vector<8x1xf32> to vector<8x256xf32>
    %34 = arith.addf %32, %33 : vector<8x256xf32>
    %35 = arith.negf %34 : vector<8x256xf32>
    %36 = math.exp %35 : vector<8x256xf32>
    %cst_19 = arith.constant 1.000000e+00 : f32
    %37 = vector.broadcast %cst_19 : f32 to vector<8x256xf32>
    %38 = arith.addf %37, %36 : vector<8x256xf32>
    %39 = arith.divf %37, %38 : vector<8x256xf32>
    %cst_20 = arith.constant dense<0.000000e+00> : vector<32x256xf32>
    %40 = tpu.matmul %1, %39, %cst_20 {dimension_numbers = #tpu.dot_dimension_numbers<[1], [0], [0], [1], [0, 0, 1, 1], [], []>, precision = #tpu.contract_precision<fp32>} : vector<32x8xf32>, vector<8x256xf32>, vector<32x256xf32> -> vector<32x256xf32>
    %41 = arith.mulf %6, %40 : vector<32x256xf32>
    %c0_21 = arith.constant 0 : index
    %c0_22 = arith.constant 0 : index
    %42 = vector.load %arg6[%c0_21, %c0_22] : memref<32x256xf32, #tpu.memory_space<vmem>>, vector<32x256xf32>
    tpu.vector_store %arg6[%c0_21, %c0_22], %41 {strides = array<i32>} : memref<32x256xf32, #tpu.memory_space<vmem>>, vector<32x256xf32>,
    return
  }
  func.func @transform_0(%arg0: i32) -> (i32, i32) {
    %c0_i32 = arith.constant 0 : i32
    %c0_i32_0 = arith.constant 0 : i32
    return %arg0, %c0_i32 : i32, i32
  }
  func.func @transform_1(%arg0: i32) -> (i32, i32, i32) {
    %c0_i32 = arith.constant 0 : i32
    %c0_i32_0 = arith.constant 0 : i32
    %c0_i32_1 = arith.constant 0 : i32
    return %arg0, %c0_i32, %c0_i32_0 : i32, i32, i32
  }
  func.func @transform_2(%arg0: i32) -> (i32, i32, i32) {
    %c0_i32 = arith.constant 0 : i32
    %c0_i32_0 = arith.constant 0 : i32
    %c0_i32_1 = arith.constant 0 : i32
    return %arg0, %c0_i32, %c0_i32_0 : i32, i32, i32
  }
  func.func @transform_3(%arg0: i32) -> (i32, i32) {
    %c0_i32 = arith.constant 0 : i32
    %c0_i32_0 = arith.constant 0 : i32
    %c0_i32_1 = arith.constant 0 : i32
    return %c0_i32, %c0_i32_0 : i32, i32
  }
  func.func @transform_4(%arg0: i32) -> (i32, i32) {
    %c0_i32 = arith.constant 0 : i32
    %c0_i32_0 = arith.constant 0 : i32
    %c0_i32_1 = arith.constant 0 : i32
    return %c0_i32, %c0_i32_0 : i32, i32
  }
  func.func @transform_5(%arg0: i32) -> (i32, i32) {
    %c0_i32 = arith.constant 0 : i32
    %c0_i32_0 = arith.constant 0 : i32
    return %arg0, %c0_i32 : i32, i32
  }
}

</mosaic_0001>

<bundles_post_ra>
// kernel: tpu_custom_call.1
= control target key start
LH: loop header
LB: loop body
LE: loop exit
PB: predicated region body
PF: predicated region fallthrough
CT: control target
= control target key end

     0   :  { %10 = vsyncpa [#allocation3], 0  ;;  %s2377_s0 = inlined_call_operand.hbm [shape: f32[64,256], index: 0, kind: input, shape index: {}]   ;;  %s2378_s1 = inlined_call_operand.vmem [shape: f32[2,8,1], index: 1, kind: input, shape index: {}]   ;;  %s2379_s2 = inlined_call_operand.vmem [shape: f32[2,8,1], index: 2, kind: input, shape index: {}]   ;;  %s2380_s3 = inlined_call_operand.vmem [shape: f32[8,32], index: 3, kind: input, shape index: {}]   ;;  %s2381_s4 = inlined_call_operand.vmem [shape: f32[32,8], index: 4, kind: input, shape index: {}]   ;;  %s2382_s5 = inlined_call_operand.hbm [shape: f32[64,256], index: 5, kind: output, shape index: {}]  }
   0x1   :  { %12 = vsyncpa [#allocation3 + $0x1], 0 }
   0x2   :  { %13 = vsyncpa [#allocation4], 0 }
   0x3   :  { %15 = vsyncpa [#allocation4 + $0x1], 0  ;;  %s1994_s18 = smov 0   ;;  %s1996_s19 = smov 0  }
   0x4   :  { %s1998_s20 = smov 0   ;;  %s2000_s21 = smov 0  }
   0x5 LB: > { %s2015_s22 = sadd.s32 4294967295, %s1954_s21   ;;  %s1668_s23 = sadd.s32 4294967294, %s1954_s21   ;;  %s1954_s21 = sphi %s2000_s21, %s2395_s21   ;;  %s1950_s20 = sphi %s1998_s20, %s2394_s20   ;;  %s1946_s19 = sphi %s1996_s19, %s2393_s19   ;;  %s1942_s18 = sphi %s1994_s18, %s2392_s18  }
   0x6   : > { %s2019_s24 = sadd.s32 1, %s1954_s21   ;;  %s28_s25 = sadd.s32 1, %s1950_s20 }
   0x7   : > { %s25_s26 = ssub.s32 %s1954_s21, %s2019_s24  ;;  %p35_p0 = scmp.ne.s32.totalorder %s1950_s20, %s1946_s19 }
   0x8   : > { %p26_p1 = scmp.eq.s32.totalorder %s25_s26, 0  ;;  %p36_p2 = scmp.eq.s32.totalorder %s1954_s21, 0 }
   0x9   : > { %p41_p3 = scmp.ne.s32.totalorder %s1946_s19, %s1942_s18  ;;  %p42_p4 = scmp.eq.s32.totalorder %s2015_s22, 0 }
   0xa   : > { %s2031_s27 = scalar_select %p26_p1, %s1950_s20, %s28_s25  }
   0xb   : > { %p2033_p5 = por %p36_p2, %p35_p0  ;;  %p2037_p6 = por %p42_p4, %p41_p3 }
   0xc   : > { %p159_p7 = scmp.eq.s32.totalorder %s2015_s22, 1  ;;  %p165_p8 = scmp.eq.s32.totalorder %s1668_s23, 1 }
   0xd   : > { %p1804_p10 = scmp.lt.s32.totalorder %s1954_s21, 2  ;;  %s191_s7 = sand.u32 1, %s1950_s20  }
   0xe   : > { %p2044_p11 = por %p159_p7, %p35_p0  ;;  %p2048_p12 = por %p165_p8, %p41_p3 }
   0xf   : > { %s1689_s8 = sshll.u32 %s1954_s21, 10  ;;  %s1671_s9 = sshll.u32 %s191_s7, 6 }
  0x10   : > { %s2386_s30 = scalar_select %p2044_p11, 1, 0 }
  0x11   : > { %s2387_s6 = scalar_select %p2048_p12, 1, 0 }
  0x12   : > { %s2057_s12 = scalar_lea.hbm %s2377_s0, %s1689_s8  ;;  %s195_s13 = scalar_lea.vmem [#allocation2], %s1671_s9 }
  0x13   : > { %s203_s14 = sshll.u32 %s195_s13, 4  ;;  %p2061_p13 = pnand %p1804_p10, %p2033_p5  ;;  %s2065_s14 = int_to_ptr.vmem [resolvable:$true] %s203_s14 }
  0x14   : > { %s2067_s16 = scalar_lea.sflag [#allocation3], %s191_s7  ;;  %s1858_s17 = scalar_lea.hbm %s2057_s12, 1024 }
  0x15   : > { %p1859_p0 = scmp.ne.s32.totalorder %s2057_s12, %s1858_s17  ;;  %p1860_p1 = pneg %p2061_p13 }
  0x16   : > { %s1863_s26 = scalar_lea.hbm %s2377_s0, 2048  ;;  %p1864_p4 = scmp.lt.u32.totalorder %s2057_s12, %s2377_s0 }
  0x17   : > { %p1861_p2 = pnand %p1860_p1, %p1859_p0  ;;  %p1865_p5 = scmp.lt.u32.totalorder %s1863_s26, %s1858_s17 }
  0x18   : > { %p1867_p8 = scmp.lt.u32.totalorder %s1858_s17, %s2057_s12 }
  0x19   : > { %p1862_p3 = pneg %p1861_p2  ;;  %p1866_p7 = por %p1865_p5, %p1864_p4 }
  0x1b   : > { %p1868_p10 = por %p1867_p8, %p1866_p7 }
  0x1d   : > { %p1869_p9 = pnand %p1868_p10, %p1862_p3 }
  0x1f   : > { %1872 = shalt.err (!%p1869_p9)
}
  0x20   : > { %s1873_s7 = scalar_lea.vmem %s2065_s14, 1024  ;;  %s1956_s9 = smov [#allocation2]  }
  0x21   : > { %p1874_p0 = scmp.ne.s32.totalorder %s2065_s14, %s1873_s7  ;;  %s1878_s10 = sshll.u32 %s1956_s9, 4  ;;  %s1879_s10 = int_to_ptr.vmem [resolvable:$false] %s1878_s10 }
  0x22   : > { %s1880_s11 = scalar_lea.vmem %s1879_s10, 2048  ;;  %p1881_p11 = scmp.lt.s32.totalorder %s2065_s14, %s1879_s10 }
  0x23   : > { %p1876_p2 = pnand %p1874_p0, %p1860_p1  ;;  %p1882_p4 = scmp.lt.s32.totalorder %s1880_s11, %s1873_s7 }
  0x25   : > { %p1877_p12 = pneg %p1876_p2  ;;  %p1883_p5 = por %p1882_p4, %p1881_p11 }
  0x27   : > { %p1884_p7 = pnand %p1883_p5, %p1877_p12 }
  0x29   : > { %1887 = shalt.err (!%p1884_p7)
}
  0x2a   : > { %s1957_s13 = smov 256   ;;  %s1958_s17 = smov 16  }
  0x2b   : > { %1799 = dma.hbm_to_vmem [thread:$0]  (!%p2061_p13), %s2057_s12, 1024, %s2065_s14, %s2067_s16, %s1957_s13, %s1957_s13, %s1958_s17  }
  0x2c   : > { %p1675_p9 = scmp.ge.s32.totalorder %s1954_s21, 1  ;;  %p225_p1 = scmp.lt.s32.totalorder %s1954_s21, 3 }
  0x2e   : > { %p226_p3 = pnand %p1675_p9, %p225_p1 }
  0x2f   : > { %s2098_s23 = sand.u32 (!%p226_p3), 1, %s1946_s19  }
  0x30   : > { %229 = sbr.rel (%p226_p3) target bundleno = 1276 (0x4fc), region = 40  ;;  %s1676_s25 = sshll.u32 (!%p226_p3), %s2098_s23, 6 }
  0x31   : > { %s232_s26 = scalar_lea.sflag (!%p226_p3), [#allocation3], %s2098_s23  ;;  %s235_s28 = scalar_lea.vmem (!%p226_p3), [#allocation2], %s1676_s25 }
  0x37   : > { %1933 = dma.done.wait (%p2037_p6), %s232_s26, 1024  }
  0x38   : > { %1935 = vsyncadd (%p2037_p6), %s232_s26, 4294966272  ;;  %v2108_v0 = vld [vmem:[%s235_s28 + $0x20] sm:$0xff]  ;;  %v2110_v1 = vld [vmem:[%s235_s28 + $0x28] sm:$0xff]  ;;  %v1959_v12 = vmov 0.0   ;;  %vm319_vm0 = vcmask 261120   ;;  %p271_p6 = scmp.lt.s32.totalorder %s2015_s22, 1 }
  0x39   : > { %v2112_v2 = vld [vmem:[%s235_s28] sm:$0xff]  ;;  %v301_v3 = vadd.f32 %v2110_v1, %v2108_v0  ;;  %v2116_v4 = vld [vmem:[%s235_s28 + $0x8] sm:$0xff]  ;;  %v2118_v5 = vld [vmem:[%s235_s28 + $0x30] sm:$0xff]  ;;  %395 = vmatprep.mubr.f32.mxu0 %v1959_v12  ;;  %1120 = vmatprep.mubr.f32.mxu1 %v1959_v12  ;;  %vm915_vm3 = vcmask 64512   ;;  %s269_s16 = scalar_lea.vmem [#allocation5], %s1676_s25  ;;  %s1691_s25 = sshll.u32 %s2015_s22, 10 }
  0x3a   : > { %v2120_v6 = vld [vmem:[%s235_s28 + $0x38] sm:$0xff]  ;;  %v295_v7 = vadd.f32 %v2116_v4, %v2112_v2  ;;  %v2124_v8 = vld [vmem:[%s235_s28 + $0x10] sm:$0xff]  ;;  %v280_v13 = vld [vmem:[%s2380_s3] sm:$0xff]  ;;  %s272_s14 = scalar_select %p271_p6, %s2015_s22, 1 }
  0x3b   : > { %v2126_v9 = vld [vmem:[%s235_s28 + $0x18] sm:$0xff]  ;;  %302 = vadd.xlane.f32.xlu1 %v301_v3  ;;  %v304_v10 = vadd.f32 %v2120_v6, %v2118_v5  ;;  %v321_v14 = vsel %vm319_vm0, %v280_v13, 0  ;;  %s1571_s8 = sshll.u32 %s269_s16, 4  ;;  %s2332_s10 = scalar_lea.hbm %s2382_s5, %s1691_s25  ;;  %s2326_s8 = int_to_ptr.vmem [resolvable:$true] %s1571_s8 }
  0x3c   : > { %296 = vadd.xlane.f32.xlu0 %v295_v7  ;;  %v298_v11 = vadd.f32 %v2126_v9, %v2124_v8  ;;  %v2137_v18 = vand.u32 4294901760, %v321_v14  ;;  %s1678_s15 = sshll.u32 %s272_s14, 3  ;;  %s1557_s22 = scalar_lea.sflag [#allocation4], %s2098_s23 }
  0x3d   : > { %s278_s7 = scalar_lea.vmem %s2379_s2, %s1678_s15  ;;  %s274_s11 = scalar_lea.vmem %s2378_s1, %s1678_s15 }
  0x3e   : > { %v2144_v28 = vsub.f32 %v321_v14, %v2137_v18  ;;  %p2389_p12 = scmp.ne.s32.totalorder %s2386_s30, 0  ;;  %s1961_s13 = smov [#allocation5]  }
  0x3f   : > { %305 = vadd.xlane.f32.xlu1 %v304_v10  ;;  %s1892_s17 = sshll.u32 %s1961_s13, 4  ;;  %s1893_s17 = int_to_ptr.vmem [resolvable:$false] %s1892_s17 }
  0x40   : > { %299 = vadd.xlane.f32.xlu0 %v298_v11  ;;  %v398_v42 = vand.u32 4294901760, %v2144_v28  ;;  %s1894_s26 = scalar_lea.vmem %s1893_s17, 2048  ;;  %p1895_p10 = scmp.lt.s32.totalorder %s2326_s8, %s1893_s17 }
  0x42   : > { %v399_v57 = vsub.f32 %v2144_v28, %v398_v42 }
  0x44   : > { %v400_v14 = vand.u32 4294901760, %v399_v57  ;;  %v285_v57 = vld [vmem:[%s274_s11] sm:$0xff]  ;;  %s1888_s11 = scalar_lea.vmem %s2326_s8, 1024 }
  0x45   : > { %p1889_p11 = scmp.ne.s32.totalorder %s2326_s8, %s1888_s11  ;;  %p1896_p0 = scmp.lt.s32.totalorder %s1894_s26, %s1888_s11 }
  0x47   : > { %p1890_p13 = pnand %p1889_p11, %p2389_p12  ;;  %p1897_p2 = por %p1896_p0, %p1895_p10 }
  0x49   : > { %p1891_p8 = pneg %p1890_p13 }
  0x4b   : > { %p1898_p4 = pnand %p1897_p2, %p1891_p8 }
  0xc8   : > { %v303_v15 = vpop.xlane.xlu1 %302 }
  0xc9   : > { %v309_v16 = vmul.f32 0.00390625, %v303_v15  ;;  %v297_v17 = vpop.xlane.xlu0 %296 }
  0xca   : > { %v307_v19 = vmul.f32 0.00390625, %v297_v17 }
  0xcb   : > { %v315_v20 = vmul.f32 %v309_v16, %v2108_v0  ;;  %v316_v21 = vmul.f32 %v309_v16, %v2110_v1 }
  0xcc   : > { %v311_v22 = vmul.f32 %v307_v19, %v2112_v2  ;;  %v312_v23 = vmul.f32 %v307_v19, %v2116_v4  ;;  %v306_v24 = vpop.xlane.xlu1 %305 }
  0xcd   : > { %v331_v25 = vand.u32 4294901760, %v316_v21  ;;  %v310_v26 = vmul.f32 0.00390625, %v306_v24  ;;  %v300_v27 = vpop.xlane.xlu0 %299  ;;  %v333_v32 = vand.u32 4294901760, %v315_v20 }
  0xce   : > { %v323_v29 = vand.u32 4294901760, %v312_v23  ;;  %v325_v30 = vand.u32 4294901760, %v311_v22  ;;  %v308_v31 = vmul.f32 0.00390625, %v300_v27 }
  0xcf   : > { %v2146_v33 = vsub.f32 %v316_v21, %v331_v25  ;;  %v317_v34 = vmul.f32 %v310_v26, %v2118_v5  ;;  %v318_v35 = vmul.f32 %v310_v26, %v2120_v6  ;;  %v2159_v47 = vsub.f32 %v315_v20, %v333_v32 }
  0xd0   : > { %v2150_v36 = vsub.f32 %v312_v23, %v323_v29  ;;  %v2152_v37 = vsub.f32 %v311_v22, %v325_v30  ;;  %v313_v38 = vmul.f32 %v308_v31, %v2124_v8  ;;  %v314_v39 = vmul.f32 %v308_v31, %v2126_v9 }
  0xd1   : > { %v335_v40 = vand.u32 4294901760, %v318_v35  ;;  %v337_v41 = vand.u32 4294901760, %v317_v34  ;;  %v433_v53 = vand.u32 4294901760, %v2146_v33  ;;  %v439_v62 = vand.u32 4294901760, %v2159_v47 }
  0xd2   : > { %v415_v43 = vand.u32 4294901760, %v2152_v37  ;;  %v327_v44 = vand.u32 4294901760, %v314_v39  ;;  %v329_v45 = vand.u32 4294901760, %v313_v38  ;;  %v409_v46 = vand.u32 4294901760, %v2150_v36 }
  0xd3   : > { %v2161_v48 = vsub.f32 %v318_v35, %v335_v40  ;;  %v2163_v49 = vsub.f32 %v317_v34, %v337_v41  ;;  %v2171_v56 = vpack.c.bf16 %v335_v40, %v331_v25  ;;  %v434_v10 = vsub.f32 %v2146_v33, %v433_v53 }
  0xd4   : > { %v420_v50 = vsub.f32 %v314_v39, %v327_v44  ;;  %v426_v51 = vsub.f32 %v313_v38, %v329_v45  ;;  %v2165_v52 = vpack.c.bf16 %v327_v44, %v323_v29  ;;  %v2169_v55 = vpack.c.bf16 %v329_v45, %v325_v30 }
  0xd5   : > { %v451_v54 = vand.u32 4294901760, %v2163_v49  ;;  %v416_v58 = vsub.f32 %v2152_v37, %v415_v43  ;;  %v410_v60 = vsub.f32 %v2150_v36, %v409_v46  ;;  %v445_v63 = vand.u32 4294901760, %v2161_v48 }
  0xd6   : > { %v427_v59 = vand.u32 4294901760, %v426_v51  ;;  %1693 = vmatprep.subr.bf16.mxu0 %v2165_v52  ;;  %v421_v61 = vand.u32 4294901760, %v420_v50  ;;  %v1698_v13 = vpack.c.bf16 %v337_v41, %v333_v32  ;;  %v440_v21 = vsub.f32 %v2159_v47, %v439_v62 }
  0xd7   : > { %1695 = vmatpush1.bf16.msra.mxu0 %v2169_v55  ;;  %v452_v11 = vsub.f32 %v2163_v49, %v451_v54  ;;  %v446_v15 = vsub.f32 %v2161_v48, %v445_v63  ;;  %v411_v16 = vand.u32 4294901760, %v410_v60  ;;  %v417_v19 = vand.u32 4294901760, %v416_v58 }
  0xd8   : > { %v428_v3 = vsub.f32 %v426_v51, %v427_v59  ;;  %1697 = vmatprep.subr.bf16.mxu0 %v2171_v56  ;;  %v422_v7 = vsub.f32 %v420_v50, %v421_v61  ;;  %v435_v25 = vand.u32 4294901760, %v434_v10  ;;  %v441_v29 = vand.u32 4294901760, %v440_v21 }
  0xd9   : > { %v447_v22 = vand.u32 4294901760, %v446_v15  ;;  %v453_v26 = vand.u32 4294901760, %v452_v11  ;;  %v1708_v31 = vpack.c.bf16 %v420_v50, %v2150_v36  ;;  %v1710_v32 = vpack.c.bf16 %v426_v51, %v2152_v37 }
  0xda   : > { %v423_v17 = vand.u32 4294901760, %v422_v7  ;;  %v429_v20 = vand.u32 4294901760, %v428_v3  ;;  %v1712_v34 = vpack.c.bf16 %v2161_v48, %v2146_v33  ;;  %v1714_v35 = vpack.c.bf16 %v2163_v49, %v2159_v47 }
  0xdb   : > { %1699 = vmatpush1.bf16.msra.mxu0 %v1698_v13  ;;  %v1704_v27 = vpack.c.bf16 %v447_v22, %v435_v25  ;;  %v1706_v30 = vpack.c.bf16 %v453_v26, %v441_v29  ;;  %v1724_v33 = vpack.c.bf16 %v421_v61, %v409_v46  ;;  %v1726_v38 = vpack.c.bf16 %v427_v59, %v415_v43  ;;  %v282_v22 = vld [vmem:[%s2381_s4 + $0x8] sm:$0xff]  ;;  %v283_v26 = vld [vmem:[%s2381_s4 + $0x10] sm:$0xff] }
  0xdc   : > { %v1700_v23 = vpack.c.bf16 %v423_v17, %v411_v16  ;;  %v1702_v24 = vpack.c.bf16 %v429_v20, %v417_v19  ;;  %v1728_v39 = vpack.c.bf16 %v445_v63, %v433_v53  ;;  %v1730_v40 = vpack.c.bf16 %v451_v54, %v439_v62 }
  0xdd   : > { %v1960_v48 = vmov 0  }
  0xde   : > { %401 = vmatmul.mubr.f32.vlgmr.msra.gmra.mrb[0].mxu0 %v400_v14  ;;  %1701 = vmatprep.subr.bf16.mxu0 %v1700_v23  ;;  %v920_v23 = vsel %vm915_vm3, %v282_v22, 0 }
  0xdf   : > { %1703 = vmatpush1.bf16.msra.mxu0 %v1702_v24  ;;  %511 = vmatprep.mubr.f32.mxu0 %v1959_v12  ;;  %v2245_v25 = vand.u32 4294901760, %v920_v23 }
  0xe0   : > { %1705 = vmatprep.subr.bf16.mxu0 %v1704_v27  ;;  %1844 = vset.pattern.permute.xlu0 %v1960_v48 }
  0xe1   : > { %1845 = vset.pattern.permute.xlu1 %v1960_v48  ;;  %v2254_v29 = vsub.f32 %v920_v23, %v2245_v25 }
  0xe3   : > { %1707 = vmatpush1.bf16.msra.mxu0 %v1706_v30  ;;  %v923_v30 = vsel %vm915_vm3, %v283_v26, 0 }
  0xe4   : > { %1709 = vmatprep.subr.bf16.mxu0 %v1708_v31 }
  0xe6   : > { %513 = vmatmul.mubr.f32.vlgmr.msra.gmra.mrb[0].mxu0 %v2137_v18 }
  0xe7   : > { %1711 = vmatpush1.bf16.msra.mxu0 %v1710_v32  ;;  %599 = vmatprep.mubr.f32.mxu0 %v1959_v12  ;;  %v284_v32 = vld [vmem:[%s2381_s4 + $0x18] sm:$0xff] }
  0xe8   : > { %1713 = vmatprep.subr.bf16.mxu0 %v1712_v34  ;;  %v1008_v34 = vand.u32 4294901760, %v2254_v29 }
  0xeb   : > { %1715 = vmatpush1.bf16.msra.mxu0 %v1714_v35 }
  0xec   : > { %1717 = vmatprep.subr.bf16.mxu0 %v2165_v52 }
  0xee   : > { %602 = vmatmul.mubr.f32.vlgmr.msra.gmra.mrb[0].mxu0 %v2144_v28 }
  0xef   : > { %1719 = vmatpush1.bf16.msra.mxu0 %v2169_v55  ;;  %680 = vmatprep.mubr.f32.mxu0 %v1959_v12 }
  0xf0   : > { %1721 = vmatprep.subr.bf16.mxu0 %v2171_v56 }
  0xf3   : > { %1723 = vmatpush1.bf16.msra.mxu0 %v1698_v13 }
  0xf4   : > { %1725 = vmatprep.subr.bf16.mxu0 %v1724_v33 }
  0xf6   : > { %684 = vmatmul.mubr.f32.vlgmr.msra.gmra.mrb[0].mxu0 %v398_v42 }
  0xf7   : > { %1727 = vmatpush1.bf16.msra.mxu0 %v1726_v38  ;;  %778 = vmatprep.mubr.f32.mxu0 %v1959_v12 }
  0xf8   : > { %1729 = vmatprep.subr.bf16.mxu0 %v1728_v39 }
  0xfb   : > { %1731 = vmatpush1.bf16.msra.mxu0 %v1730_v40  ;;  %v2263_v40 = vand.u32 4294901760, %v923_v30 }
  0xfc   : > { %1733 = vmatprep.subr.bf16.mxu0 %v2165_v52 }
  0xfe   : > { %780 = vmatmul.mubr.f32.vlgmr.msra.gmra.mrb[0].mxu0 %v2137_v18 }
  0xff   : > { %1735 = vmatpush1.bf16.msra.mxu0 %v2169_v55  ;;  %858 = vmatprep.mubr.f32.mxu0 %v1959_v12 }
 0x100   : > { %1737 = vmatprep.subr.bf16.mxu0 %v2171_v56 }
 0x103   : > { %1739 = vmatpush1.bf16.msra.mxu0 %v1698_v13  ;;  %v281_v13 = vld [vmem:[%s2381_s4] sm:$0xff] }
 0x104   : > { %v917_v14 = vsel %vm915_vm3, %v281_v13, 0 }
 0x105   : > { %v2235_v15 = vand.u32 4294901760, %v917_v14 }
 0x106   : > { %860 = vmatmul.mubr.f32.vlgmr.msra.gmra.mrb[0].mxu0 %v2137_v18  ;;  %v286_v18 = vld [vmem:[%s278_s7] sm:$0xff] }
 0x107   : > { %994 = vmatprep.mubr.f32.mxu0 %v1959_v12  ;;  %v2238_v21 = vsub.f32 %v917_v14, %v2235_v15 }
 0x109   : > { %v997_v24 = vand.u32 4294901760, %v2238_v21 }
 0x10b   : > { %v998_v27 = vsub.f32 %v2238_v21, %v997_v24 }
 0x10d   : > { %v999_v39 = vand.u32 4294901760, %v998_v27 }
 0x1d9   : > { %v861_v28 = vpop.f32.mrb[0].mxu0 }
 0x1da   : > { %v863_v36 = vpop.f32.mrb[1].mxu0 }
 0x1db   : > { %v866_v37 = vadd.f32 %v863_v36, %v861_v28 }
 0x1dd   : > { %867 = vadd.xlane.f32.xlu0 %v866_v37  ;;  %v926_v37 = vsel %vm915_vm3, %v284_v32, 0 }
 0x26a   : > { %v868_v41 = vpop.xlane.xlu0 %867 }
 0x26b   : > { %v869_v42 = vmul.f32 0.00390625, %v868_v41 }
 0x26d   : > { %v870_v43 = vsub.f32 %v861_v28, %v869_v42  ;;  %v871_v44 = vsub.f32 %v863_v36, %v869_v42  ;;  %v1009_v28 = vsub.f32 %v2254_v29, %v1008_v34  ;;  %v1018_v42 = vsub.f32 %v923_v30, %v2263_v40 }
 0x26f   : > { %v872_v45 = vmul.f32 %v870_v43, %v870_v43  ;;  %v873_v46 = vmul.f32 %v871_v44, %v871_v44 }
 0x271   : > { %v874_v47 = vadd.f32 %v873_v46, %v872_v45  ;;  %v2272_v45 = vand.u32 4294901760, %v926_v37  ;;  %v1019_v46 = vand.u32 4294901760, %v1018_v42 }
 0x273   : > { %875 = vadd.xlane.f32.xlu1 %v874_v47  ;;  %v1010_v47 = vand.u32 4294901760, %v1009_v28 }
 0x284   : > { %898 = vperm.xlu1 %1845, %v286_v18  }
 0x300   : > { %v876_v49 = vpop.xlane.xlu1 %875 }
 0x301   : > { %v877_v50 = vmul.f32 0.003921569, %v876_v49  ;;  %v1029_v49 = vsub.f32 %v926_v37, %v2272_v45 }
 0x303   : > { %1846 = vrsqrt.f32 %v877_v50  ;;  %vm880_vm1 = vcmp.eq.f32.partialorder %v877_v50, inf  ;;  %v883_v53 = vand.u32 2147483648, %v877_v50  ;;  %vm882_vm2 = vcmp.eq.f32.partialorder %v877_v50, 0.0 }
 0x304   : > { %v899_v61 = vpop.permute.xlu1 %898 }
 0x30d   : > { %v1847_v51 = vpop.eup %1846 }
 0x30e   : > { %v879_v52 = vmul.f32 %v1847_v51, %v877_v50 }
 0x310   : > { %v881_v54 = vsel %vm880_vm1, %v877_v50, %v879_v52  ;;  %v1020_v50 = vsub.f32 %v1018_v42, %v1019_v46 }
 0x311   : > { %v884_v55 = vsel %vm882_vm2, %v883_v53, %v881_v54  ;;  %v1030_v53 = vand.u32 4294901760, %v1029_v49 }
 0x312   : > { %v885_v56 = vadd.f32 1e-05, %v884_v55  ;;  %v1021_v54 = vand.u32 4294901760, %v1020_v50 }
 0x313   : > { %v1031_v55 = vsub.f32 %v1029_v49, %v1030_v53 }
 0x314   : > { %1848 = vrcp.f32 %v885_v56 }
 0x315   : > { %v1032_v56 = vand.u32 4294901760, %v1031_v55 }
 0x31e   : > { %v1849_v58 = vpop.eup %1848 }
 0x31f   : > { %v888_v59 = vmul.f32 %v1849_v58, %v285_v57 }
 0x321   : > { %891 = vperm.xlu0 %1844, %v888_v59  }
 0x3a0   : > { %v892_v60 = vpop.permute.xlu0 %891 }
 0x3a1   : > { %v894_v62 = vmul.f32 %v892_v60, %v870_v43  ;;  %v895_v63 = vmul.f32 %v892_v60, %v871_v44 }
 0x3a3   : > { %v901_v3 = vadd.f32 %v899_v61, %v894_v62  ;;  %v902_v7 = vadd.f32 %v899_v61, %v895_v63 }
 0x3a5   : > { %v1680_v10 = vmul.f32 -1.442695, %v901_v3  ;;  %v1681_v11 = vmul.f32 -1.442695, %v902_v7 }
 0x3a7   : > { %1850 = vpow2.f32 %v1680_v10 }
 0x3a8   : > { %1852 = vpow2.f32 %v1681_v11 }
 0x3b1   : > { %v1851_v16 = vpop.eup %1850 }
 0x3b2   : > { %v1853_v17 = vpop.eup %1852  ;;  %v909_v19 = vadd.f32 1.0, %v1851_v16 }
 0x3b3   : > { %v910_v20 = vadd.f32 1.0, %v1853_v17 }
 0x3b4   : > { %1854 = vrcp.f32 %v909_v19 }
 0x3b5   : > { %1856 = vrcp.f32 %v910_v20 }
 0x3be   : > { %v1855_v31 = vpop.eup %1854 }
 0x3bf   : > { %v1857_v35 = vpop.eup %1856  ;;  %v2261_v33 = vand.u32 4294901760, %v1855_v31 }
 0x3c0   : > { %v928_v38 = vand.u32 4294901760, %v1857_v35 }
 0x3c1   : > { %v1046_v36 = vsub.f32 %v1855_v31, %v2261_v33 }
 0x3c2   : > { %929 = vmatprep.subr.mxu0 %v928_v38  ;;  %v1040_v41 = vsub.f32 %v1857_v35, %v928_v38 }
 0x3c3   : > { %931 = vmatpush1.msra.mxu0 %v2261_v33  ;;  %v1047_v43 = vand.u32 4294901760, %v1046_v36 }
 0x3c4   : > { %v1041_v44 = vand.u32 4294901760, %v1040_v41  ;;  %1000 = vmatmul.mubr.f32.vlgmr.msra.gmra.mrb[2].mxu0 %v999_v39 }
 0x3c5   : > { %v1048_v48 = vsub.f32 %v1046_v36, %v1047_v43  ;;  %1005 = vmatprep.mubr.f32.mxu0 %v1959_v12 }
 0x3c6   : > { %v1042_v18 = vsub.f32 %v1040_v41, %v1041_v44 }
 0x3c7   : > { %v1049_v51 = vand.u32 4294901760, %v1048_v48 }
 0x3c8   : > { %v1043_v52 = vand.u32 4294901760, %v1042_v18  ;;  %1011 = vmatmul.mubr.f32.gmra.mrb[4].mxu0 %v1010_v47 }
 0x3c9   : > { %1016 = vmatprep.mubr.f32.mxu0 %v1959_v12 }
 0x3ca   : > { %1044 = vmatprep.subr.mxu0 %v1043_v52  ;;  %1740 = vmatprep.subr.mxu1 %v1043_v52 }
 0x3cb   : > { %1050 = vmatpush1.msra.mxu0 %v1049_v51  ;;  %1741 = vmatpush1.msra.mxu1 %v1049_v51 }
 0x3cc   : > { %1122 = vmatmul.mubr.f32.vlgmr.msra.gmra.mrb[0].mxu1 %v2245_v25  ;;  %1144 = vmatprep.subr.mxu1 %v1040_v41 }
 0x3cd   : > { %1147 = vmatpush1.msra.mxu1 %v1046_v36  ;;  %1127 = vmatprep.mubr.f32.mxu1 %v1959_v12 }
 0x3ce   : > { %1244 = vmatprep.subr.mxu1 %v928_v38  ;;  %1022 = vmatmul.mubr.f32.gmra.mrb[6].mxu0 %v1021_v54 }
 0x3cf   : > { %1027 = vmatprep.mubr.f32.mxu0 %v1959_v12 }
 0x3d0   : > { %1129 = vmatmul.mubr.f32.gmra.mrb[2].mxu1 %v2263_v40 }
 0x3d1   : > { %1134 = vmatprep.mubr.f32.mxu1 %v1959_v12 }
 0x3d2   : > { %1033 = vmatmul.mubr.f32.gmra.mrb[8].mxu0 %v1032_v56 }
 0x3d3   : > { %1113 = vmatprep.mubr.f32.mxu0 %v1959_v12 }
 0x3d4   : > { %1136 = vmatmul.mubr.f32.gmra.mrb[4].mxu1 %v2272_v45 }
 0x3d5   : > { %1210 = vmatprep.mubr.f32.mxu1 %v1959_v12 }
 0x3d6   : > { %1115 = vmatmul.mubr.f32.vlgmr.msra.gmra.mrb[2].mxu0 %v2235_v15 }
 0x3d8   : > { %1213 = vmatmul.mubr.f32.vlgmr.msra.gmra.mrb[6].mxu1 %v2238_v21 }
 0x3d9   : > { %1246 = vmatpush1.msra.mxu1 %v2261_v33  ;;  %1218 = vmatprep.mubr.f32.mxu1 %v1959_v12 }
 0x3da   : > { %1349 = vmatprep.subr.mxu1 %v1041_v44 }
 0x3dc   : > { %1221 = vmatmul.mubr.f32.gmra.mrb[0].mxu1 %v2254_v29 }
 0x3dd   : > { %1226 = vmatprep.mubr.f32.mxu1 %v1959_v12 }
 0x3e0   : > { %1229 = vmatmul.mubr.f32.gmra.mrb[2].mxu1 %v1018_v42 }
 0x3e1   : > { %1234 = vmatprep.mubr.f32.mxu1 %v1959_v12 }
 0x3e4   : > { %1237 = vmatmul.mubr.f32.gmra.mrb[4].mxu1 %v1029_v49 }
 0x3e5   : > { %1309 = vmatprep.mubr.f32.mxu1 %v1959_v12 }
 0x3e8   : > { %1313 = vmatmul.mubr.f32.vlgmr.msra.gmra.mrb[6].mxu1 %v997_v24 }
 0x3e9   : > { %1353 = vmatpush1.msra.mxu1 %v1047_v43  ;;  %1318 = vmatprep.mubr.f32.mxu1 %v1959_v12 }
 0x3ea   : > { %1446 = vmatprep.subr.mxu1 %v928_v38 }
 0x3ec   : > { %1322 = vmatmul.mubr.f32.gmra.mrb[0].mxu1 %v1008_v34 }
 0x3ed   : > { %1327 = vmatprep.mubr.f32.mxu1 %v1959_v12 }
 0x3f0   : > { %1331 = vmatmul.mubr.f32.gmra.mrb[2].mxu1 %v1019_v46 }
 0x3f1   : > { %1336 = vmatprep.mubr.f32.mxu1 %v1959_v12 }
 0x3f4   : > { %1340 = vmatmul.mubr.f32.gmra.mrb[4].mxu1 %v1030_v53 }
 0x3f5   : > { %1416 = vmatprep.mubr.f32.mxu1 %v1959_v12 }
 0x3f8   : > { %1418 = vmatmul.mubr.f32.vlgmr.msra.gmra.mrb[6].mxu1 %v2235_v15 }
 0x3f9   : > { %1448 = vmatpush1.msra.mxu1 %v2261_v33  ;;  %1423 = vmatprep.mubr.f32.mxu1 %v1959_v12 }
 0x3fc   : > { %1425 = vmatmul.mubr.f32.gmra.mrb[0].mxu1 %v2245_v25 }
 0x3fd   : > { %1430 = vmatprep.mubr.f32.mxu1 %v1959_v12 }
 0x400   : > { %1432 = vmatmul.mubr.f32.gmra.mrb[2].mxu1 %v2263_v40 }
 0x401   : > { %1437 = vmatprep.mubr.f32.mxu1 %v1959_v12 }
 0x404   : > { %1439 = vmatmul.mubr.f32.gmra.mrb[4].mxu1 %v2272_v45 }
 0x405   : > { %1511 = vmatprep.mubr.f32.mxu1 %v1959_v12 }
 0x408   : > { %1513 = vmatmul.mubr.f32.vlgmr.msra.gmra.mrb[6].mxu1 %v2235_v15 }
 0x409   : > { %1518 = vmatprep.mubr.f32.mxu1 %v1959_v12 }
 0x40c   : > { %1520 = vmatmul.mubr.f32.gmra.mrb[0].mxu1 %v2245_v25 }
 0x40d   : > { %1525 = vmatprep.mubr.f32.mxu1 %v1959_v12 }
 0x410   : > { %1527 = vmatmul.mubr.f32.gmra.mrb[2].mxu1 %v2263_v40 }
 0x411   : > { %1532 = vmatprep.mubr.f32.mxu1 %v1959_v12 }
 0x414   : > { %1534 = vmatmul.mubr.f32.gmra.mrb[4].mxu1 %v2272_v45 }
 0x49b   : > { %v1012_v57 = vpop.f32.mrb[4].mxu0 }
 0x49c   : > { %v1014_v58 = vpop.f32.mrb[5].mxu0 }
 0x4a1   : > { %v1023_v59 = vpop.f32.mrb[6].mxu0 }
 0x4a2   : > { %v1025_v60 = vpop.f32.mrb[7].mxu0 }
 0x4a5   : > { %v1034_v61 = vpop.f32.mrb[8].mxu0 }
 0x4a6   : > { %v1036_v62 = vpop.f32.mrb[9].mxu0 }
 0x4a9   : > { %v1116_v63 = vpop.f32.mrb[2].mxu0 }
 0x4aa   : > { %v1118_v3 = vpop.f32.mrb[3].mxu0 }
 0x4db   : > { %v1514_v7 = vpop.f32.mrb[6].mxu1 }
 0x4dc   : > { %v1742_v10 = vadd.f32 %v1514_v7, %v1116_v63  ;;  %v1516_v11 = vpop.f32.mrb[7].mxu1 }
 0x4dd   : > { %v1743_v13 = vadd.f32 %v1516_v11, %v1118_v3 }
 0x4de   : > { %v1540_v14 = vmul.f32 %v1742_v10, %v2112_v2 }
 0x4df   : > { %v1541_v15 = vmul.f32 %v1743_v13, %v2116_v4  ;;  %v1521_v12 = vpop.f32.mrb[0].mxu1 }
 0x4e0   : > { %1548 = vst [vmem:[%s269_s16] sm:$0xff] %v1540_v14  ;;  %v1744_v16 = vadd.f32 %v1521_v12, %v1012_v57  ;;  %v1523_v17 = vpop.f32.mrb[1].mxu1 }
 0x4e1   : > { %1549 = vst [vmem:[%s269_s16 + $0x8] sm:$0xff] %v1541_v15  ;;  %v1745_v19 = vadd.f32 %v1523_v17, %v1014_v58 }
 0x4e2   : > { %v1542_v20 = vmul.f32 %v1744_v16, %v2124_v8 }
 0x4e3   : > { %v1543_v21 = vmul.f32 %v1745_v19, %v2126_v9  ;;  %v1528_v22 = vpop.f32.mrb[2].mxu1 }
 0x4e4   : > { %1550 = vst [vmem:[%s269_s16 + $0x10] sm:$0xff] %v1542_v20  ;;  %v1746_v23 = vadd.f32 %v1528_v22, %v1023_v59  ;;  %v1530_v24 = vpop.f32.mrb[3].mxu1 }
 0x4e5   : > { %1551 = vst [vmem:[%s269_s16 + $0x18] sm:$0xff] %v1543_v21  ;;  %v1747_v2 = vadd.f32 %v1530_v24, %v1025_v60 }
 0x4e6   : > { %v1544_v4 = vmul.f32 %v1746_v23, %v2108_v0 }
 0x4e7   : > { %v1545_v25 = vmul.f32 %v1747_v2, %v2110_v1  ;;  %v1535_v26 = vpop.f32.mrb[4].mxu1 }
 0x4e8   : > { %1552 = vst [vmem:[%s269_s16 + $0x20] sm:$0xff] %v1544_v4  ;;  %v1748_v27 = vadd.f32 %v1535_v26, %v1034_v61  ;;  %v1537_v8 = vpop.f32.mrb[5].mxu1 }
 0x4e9   : > { %1553 = vst [vmem:[%s269_s16 + $0x28] sm:$0xff] %v1545_v25  ;;  %v1749_v9 = vadd.f32 %v1537_v8, %v1036_v62 }
 0x4ea   : > { %v1546_v29 = vmul.f32 %v1748_v27, %v2118_v5 }
 0x4eb   : > { %v1547_v0 = vmul.f32 %v1749_v9, %v2120_v6 }
 0x4ec   : > { %1554 = vst [vmem:[%s269_s16 + $0x30] sm:$0xff] %v1546_v29 }
 0x4ed   : > { %1555 = vst [vmem:[%s269_s16 + $0x38] sm:$0xff] %v1547_v0 }
 0x4ee   : > { %1901 = shalt.err (!%p1898_p4)
}
 0x4ef   : > { %s1902_s28 = scalar_lea.hbm %s2332_s10, 1024  ;;  %s1906_s14 = scalar_lea.hbm %s2382_s5, 2048 }
 0x4f0   : > { %p1903_p5 = scmp.ne.s32.totalorder %s2332_s10, %s1902_s28  ;;  %p1907_p1 = scmp.lt.u32.totalorder %s2332_s10, %s2382_s5 }
 0x4f1   : > { %p1908_p3 = scmp.lt.u32.totalorder %s1906_s14, %s1902_s28  ;;  %p1910_p11 = scmp.lt.u32.totalorder %s1902_s28, %s2332_s10 }
 0x4f2   : > { %p1904_p7 = pnand %p1903_p5, %p2389_p12 }
 0x4f3   : > { %p1909_p6 = por %p1908_p3, %p1907_p1 }
 0x4f4   : > { %p1905_p9 = pneg %p1904_p7 }
 0x4f5   : > { %p1911_p13 = por %p1910_p11, %p1909_p6 }
 0x4f7   : > { %p1912_p8 = pnand %p1911_p13, %p1905_p9 }
 0x4f9   : > { %1915 = shalt.err (!%p1912_p8)
}
 0x4fa   : > { %s1962_s25 = smov 256   ;;  %s1963_s7 = smov 16  }
 0x4fb   : > { %1794 = dma.vmem_to_hbm [thread:$0]  (%p2389_p12), %s2326_s8, 1024, %s2332_s10, %s1557_s22, %s1962_s25, %s1962_s25, %s1963_s7  }
 0x4fc PF: > { %s1586_s9 = sand.u32 1, %s1942_s18   ;;  %p2390_p10 = scmp.ne.s32.totalorder %s2387_s6, 0 }
 0x4fd   : > { %p2391_p0 = scmp.ge.s32.totalorder %s1954_s21, 2  ;;  %s1587_s11 = scalar_lea.sflag [#allocation4], %s1586_s9 }
 0x4ff   : > { %p1801_p2 = pnand %p2391_p0, %p2390_p10 }
 0x501   : > { %1937 = dma.done.wait (!%p1801_p2), %s1587_s11, 1024  }
 0x502   : > { %1939 = vsyncadd (!%p1801_p2), %s1587_s11, 4294966272  ;;  %p18_p4 = scmp.ge.s32.totalorder %s2019_s24, 4   ;;  %s2392_s18 = smov %s1946_s19 }
 0x503   : > { %s2393_s19 = smov %s1950_s20  ;;  %s2394_s20 = smov %s2031_s27 }
 0x504   : > { %s2395_s21 = smov %s2019_s24  ;;  %20 = sbr.rel (!%p18_p4) target bundleno = 5 (0x5), region = 91 }
 0x50b   :  { %1592 = vsyncpa [#allocation3], 1 }
 0x50c   :  { %1594 = vsyncpa [#allocation3 + $0x1], 1 }
 0x50d   :  { %1595 = vsyncpa [#allocation4], 1 }
 0x50e   :  { %1597 = vsyncpa [#allocation4 + $0x1], 1 }

</bundles_post_ra>
